<compile_context>
chip_gen: v7x
topology: tpu7x:2x2x1
jax: 0.10.0
libtpu: 0.0.40
codegen_flags: <defaults>
</compile_context>

<pallas_src>
import functools

import jax
import jax.numpy as jnp
from jax.experimental import pallas as pl
from jax.experimental.pallas import tpu as pltpu

# Architecture: SPINNArchitecture(n_layers=3, features=[32, 32, 32], activation='tanh')
FEATURES = [32, 32, 32]
BATCH = 8

_LANE = 128   # lane width
_KIN = 8      # padded coordinate width: [t, x, y, 0, 0, 0, 0, 0] (sublane-aligned K)


def _round_up(n, m):
    return (n + m - 1) // m * m


# ---------------------------------------------------------------------------
# Kernel
# ---------------------------------------------------------------------------
def _spinn_kernel(n_hidden,
                  txy_ref,    # (TB, 8)            dense coordinate tile
                  w0_ref,     # (8, P)              fused first-layer weight
                  wh_ref,     # (n_hidden, P, P)    block-diag hidden weights
                  wc_ref,     # (P, 2*FPAD)         [combine1 | combine2-y] slab
                  w2c_ref,    # (FPAD, FPAD)        combine2 weight on combine1 output
                  wf_ref,     # (1, FPAD)           final layer weight row
                  bmlp_ref,   # (n_hidden+1, 1, P)  fused MLP biases
                  bc_ref,     # (2, 1, FPAD)        combine biases
                  bf_ref,     # (1, 1)              final bias
                  o_ref):     # (1, TB//128, 128)   lane-dense output block
    fpad = w2c_ref.shape[0]

    # Fused first layer of the 3 per-axis MLPs as one skinny MXU dot (TB,8)@(8,P).
    h = jnp.tanh(jnp.dot(txy_ref[...], w0_ref[...],
                         preferred_element_type=jnp.float32) + bmlp_ref[0])

    # Fused hidden layers: one lane-dense (TB,P)@(P,P) dot per layer.
    for k in range(n_hidden):
        h = jnp.tanh(jnp.dot(h, wh_ref[k], preferred_element_type=jnp.float32)
                     + bmlp_ref[k + 1])

    # Both combine projections of h in a single dot -> (TB, 2*FPAD); the two halves
    # are free vreg-boundary views.
    hc = jnp.dot(h, wc_ref[...], preferred_element_type=jnp.float32)
    c1 = jnp.tanh(hc[:, :fpad] + bc_ref[0])
    c2 = jnp.tanh(jnp.dot(c1, w2c_ref[...], preferred_element_type=jnp.float32)
                  + hc[:, fpad:] + bc_ref[1])

    # Final Linear(F,1), emitted lane-dense: out[r, c] = <c2[r*128 + c, :], wf>.
    # Each row is a tiny wf @ tile^T matmul (MXU slack) -> no lane-sparse stores.
    n_rows = o_ref.shape[1]
    rows = []
    for r in range(n_rows):
        tile = c2[r * _LANE:(r + 1) * _LANE, :]             # (128, FPAD) static slice
        rows.append(jax.lax.dot_general(
            wf_ref[...], tile,
            dimension_numbers=(((1,), (1,)), ((), ())),
            preferred_element_type=jnp.float32))            # (1, 128)
    o_ref[0] = jnp.concatenate(rows, axis=0) + bf_ref[...]


# ---------------------------------------------------------------------------
# Parameter init (torch.nn.Linear-style)
# ---------------------------------------------------------------------------
def _linear_init(key, fan_in, fan_out):
    # torch.nn.Linear default: U(-1/sqrt(fan_in), 1/sqrt(fan_in)); stored (in, out).
    kw, kb = jax.random.split(key)
    bound = 1.0 / float(fan_in) ** 0.5
    W = jax.random.uniform(kw, (fan_in, fan_out), jnp.float32, -bound, bound)
    b = jax.random.uniform(kb, (1, fan_out), jnp.float32, -bound, bound)
    return W, b


def init_spinn_params(key, features):
    F = features[-1]
    dims = [1] + list(features)
    params = {"nets": [], "c1": None, "c2": None, "final": None}
    for _ in range(3):
        layers = []
        for i in range(len(dims) - 1):
            key, sub = jax.random.split(key)
            layers.append(_linear_init(sub, dims[i], dims[i + 1]))
        params["nets"].append(layers)
    key, sub = jax.random.split(key)
    W1, b1 = _linear_init(sub, 2 * F, F)
    params["c1"] = (W1[:F, :], W1[F:, :], b1)   # (t-part, x-part, bias)
    key, sub = jax.random.split(key)
    W2, b2 = _linear_init(sub, 2 * F, F)
    params["c2"] = (W2[:F, :], W2[F:, :], b2)   # (combined-part, y-part, bias)
    key, sub = jax.random.split(key)
    params["final"] = _linear_init(sub, F, 1)
    return params


# ---------------------------------------------------------------------------
# Host-side packing into lane-aligned slabs
# ---------------------------------------------------------------------------
def pack_params(params, features):
    F = features[-1]
    dims = [1] + list(features)
    n_layers = len(features)
    P = _round_up(3 * max(features), _LANE)     # fused hidden width
    FPAD = _round_up(F, _LANE)                  # lane-padded combine width
    nets = params["nets"]

    # First layer: coordinate j (row j of the (KIN, P) matrix) feeds net j's columns.
    W0 = jnp.zeros((_KIN, P), jnp.float32)
    b0 = jnp.zeros((1, P), jnp.float32)
    for j in range(3):
        W, b = nets[j][0]                                       # (1, d1), (1, d1)
        W0 = W0.at[j, j * dims[1]:(j + 1) * dims[1]].set(W[0])
        b0 = b0.at[:, j * dims[1]:(j + 1) * dims[1]].set(b)
    bmlp = [b0]

    # Hidden layers: block-diagonal (P, P) weights, lane-padded biases.
    Wh_list = []
    for k in range(1, n_layers):
        bd = jnp.zeros((P, P), jnp.float32)
        bk = jnp.zeros((1, P), jnp.float32)
        for j in range(3):
            Wjk, bjk = nets[j][k]                               # (d_k, d_{k+1})
            bd = bd.at[j * dims[k]:(j + 1) * dims[k],
                       j * dims[k + 1]:(j + 1) * dims[k + 1]].set(Wjk)
            bk = bk.at[:, j * dims[k + 1]:(j + 1) * dims[k + 1]].set(bjk)
        Wh_list.append(bd)
        bmlp.append(bk)
    Wh = jnp.stack(Wh_list, axis=0)                             # (n_hidden, P, P)
    bmlp = jnp.stack(bmlp, axis=0)                              # (n_layers, 1, P)

    # Combine layers merged into one (P, 2*FPAD) slab:
    #   cols [0, F)          -> combine1 from [t-feat | x-feat]
    #   cols [FPAD, FPAD+F)  -> combine2's contribution from y-feat
    W1t, W1x, b1 = params["c1"]
    W2c, W2y, b2 = params["c2"]
    Wc = jnp.zeros((P, 2 * FPAD), jnp.float32)
    Wc = Wc.at[0:F, 0:F].set(W1t)
    Wc = Wc.at[F:2 * F, 0:F].set(W1x)
    Wc = Wc.at[2 * F:3 * F, FPAD:FPAD + F].set(W2y)
    W2c_pad = jnp.zeros((FPAD, FPAD), jnp.float32).at[:F, :F].set(W2c)
    bc = jnp.zeros((2, 1, FPAD), jnp.float32)
    bc = bc.at[0, :, :F].set(b1).at[1, :, :F].set(b2)

    # Final layer.
    Wf, bf = params["final"]                                    # (F, 1), (1, 1)
    wf = jnp.zeros((1, FPAD), jnp.float32).at[:, :F].set(Wf[:, 0])

    return {"W0": W0, "Wh": Wh, "Wc": Wc, "W2c": W2c_pad, "wf": wf,
            "bmlp": bmlp, "bc": bc, "bf": bf}


# ---------------------------------------------------------------------------
# Pallas wrapper
# ---------------------------------------------------------------------------
def _resident_spec(shape):
    zeros = (0,) * len(shape)
    return pl.BlockSpec(shape, lambda i, _z=zeros: _z)   # weight stays VMEM-resident


def spinn_forward_pallas(t, x, y, params, features=FEATURES, block_batch=2048):
    n_hidden = len(features) - 1
    N = t.shape[0]
    p = pack_params(params, features)

    # --- batch-tile selection: lane-dense output => multiples of 128; prefer >=2
    #     grid steps (v7x megacore) whenever there is enough work. ---
    block_batch = max(_LANE, _round_up(block_batch, _LANE))
    Nr = _round_up(max(N, 1), _LANE)
    nb = max(1, -(-Nr // block_batch))
    if nb == 1 and Nr >= 2 * _LANE:
        nb = 2
    TB = _round_up(-(-Nr // nb), _LANE)
    Npad = _round_up(Nr, TB)
    num_blocks = Npad // TB
    rows_per_block = TB // _LANE

    # Dense (Npad, 8) coordinate slab: columns [t, x, y, 0, ...].
    cols = jnp.stack([t, x, y], axis=1).astype(jnp.float32)     # (N, 3)
    txy = jnp.zeros((Npad, _KIN), jnp.float32).at[:N, :3].set(cols)

    kernel = functools.partial(_spinn_kernel, n_hidden)

    out = pl.pallas_call(
        kernel,
        out_shape=jax.ShapeDtypeStruct((num_blocks, rows_per_block, _LANE),
                                       jnp.float32),
        grid=(num_blocks,),
        in_specs=[
            pl.BlockSpec((TB, _KIN), lambda i: (i, 0)),   # coordinate batch tile
            _resident_spec(p["W0"].shape),
            _resident_spec(p["Wh"].shape),
            _resident_spec(p["Wc"].shape),
            _resident_spec(p["W2c"].shape),
            _resident_spec(p["wf"].shape),
            _resident_spec(p["bmlp"].shape),
            _resident_spec(p["bc"].shape),
            _resident_spec(p["bf"].shape),
        ],
        out_specs=pl.BlockSpec((1, rows_per_block, _LANE), lambda i: (i, 0, 0)),
        compiler_params=pltpu.CompilerParams(
            dimension_semantics=("parallel",),            # shard batch across TCs
            vmem_limit_bytes=32 * 1024 * 1024),
    )(txy, p["W0"], p["Wh"], p["Wc"], p["W2c"], p["wf"],
      p["bmlp"], p["bc"], p["bf"])

    return out.reshape(Npad)[:N]   # matches torch output.squeeze(-1) -> (batch,)


# ---------------------------------------------------------------------------
# Pure-JAX reference (mirrors the PyTorch forward) for correctness checking
# ---------------------------------------------------------------------------
def spinn_forward_ref(t, x, y, params):
    def mlp(inp, layers):
        h = inp.reshape(-1, 1)
        for (W, b) in layers:
            h = jnp.tanh(h @ W + b)
        return h

    tf = mlp(t, params["nets"][0])
    xf = mlp(x, params["nets"][1])
    yf = mlp(y, params["nets"][2])
    W1t, W1x, b1 = params["c1"]
    c1 = jnp.tanh(tf @ W1t + xf @ W1x + b1)
    W2c, W2y, b2 = params["c2"]
    c2 = jnp.tanh(c1 @ W2c + yf @ W2y + b2)
    Wf, bf = params["final"]
    return (c2 @ Wf + bf)[:, 0]


if __name__ == "__main__":
    key = jax.random.PRNGKey(0)
    kp, kt, kx, ky = jax.random.split(key, 4)

    params = init_spinn_params(kp, FEATURES)

    # Collocation points (t, x, y), each a (batch,) vector like the demo uses.
    t = jax.random.uniform(kt, (BATCH,), jnp.float32)
    x = jax.random.uniform(kx, (BATCH,), jnp.float32, -1.0, 1.0)
    y = jax.random.uniform(ky, (BATCH,), jnp.float32, -1.0, 1.0)

    out = spinn_forward_pallas(t, x, y, params)
    out = jax.block_until_ready(out)

    ref = spinn_forward_ref(t, x, y, params)
    assert out.shape == (BATCH,)
    assert jnp.allclose(out, ref, atol=1e-4, rtol=1e-4), (out, ref)

    print("KERNEL_OK")
</pallas_src>

<mosaic_0001>
module attributes {stable_mosaic.version = 11 : i64} {
  func.func @_spinn_kernel(%arg0: i32, %arg1: memref<128x8xf32, #tpu.memory_space<vmem>>, %arg2: memref<8x128xf32, #tpu.memory_space<vmem>>, %arg3: memref<2x128x128xf32, #tpu.memory_space<vmem>>, %arg4: memref<128x256xf32, #tpu.memory_space<vmem>>, %arg5: memref<128x128xf32, #tpu.memory_space<vmem>>, %arg6: memref<1x128xf32, #tpu.memory_space<vmem>>, %arg7: memref<3x1x128xf32, #tpu.memory_space<vmem>>, %arg8: memref<2x1x128xf32, #tpu.memory_space<vmem>>, %arg9: memref<1x1xf32, #tpu.memory_space<vmem>>, %arg10: memref<1x1x128xf32, #tpu.memory_space<vmem>>) attributes {dimension_semantics = [#tpu.dimension_semantics<parallel>], iteration_bounds = array<i64: 1>, scalar_prefetch = 0 : i64, scratch_operands = 0 : i64, tpu.core_type = #tpu.core_type<tc>, window_params = [{transform_indices = @transform_0, window_bounds = array<i64: 128, 8>}, {pipeline_mode = #tpu.pipeline_mode<synchronous>, transform_indices = @transform_1, window_bounds = array<i64: 8, 128>}, {pipeline_mode = #tpu.pipeline_mode<synchronous>, transform_indices = @transform_2, window_bounds = array<i64: 2, 128, 128>}, {pipeline_mode = #tpu.pipeline_mode<synchronous>, transform_indices = @transform_3, window_bounds = array<i64: 128, 256>}, {pipeline_mode = #tpu.pipeline_mode<synchronous>, transform_indices = @transform_4, window_bounds = array<i64: 128, 128>}, {pipeline_mode = #tpu.pipeline_mode<synchronous>, transform_indices = @transform_5, window_bounds = array<i64: 1, 128>}, {pipeline_mode = #tpu.pipeline_mode<synchronous>, transform_indices = @transform_6, window_bounds = array<i64: 3, 1, 128>}, {pipeline_mode = #tpu.pipeline_mode<synchronous>, transform_indices = @transform_7, window_bounds = array<i64: 2, 1, 128>}, {pipeline_mode = #tpu.pipeline_mode<synchronous>, transform_indices = @transform_8, window_bounds = array<i64: 1, 1>}, {transform_indices = @transform_9, window_bounds = array<i64: 1, 1, 128>}]} {
    %c0 = arith.constant 0 : index
    %c0_0 = arith.constant 0 : index
    %0 = vector.load %arg1[%c0, %c0_0] : memref<128x8xf32, #tpu.memory_space<vmem>>, vector<128x8xf32>
    %c0_1 = arith.constant 0 : index
    %c0_2 = arith.constant 0 : index
    %1 = vector.load %arg2[%c0_1, %c0_2] : memref<8x128xf32, #tpu.memory_space<vmem>>, vector<8x128xf32>
    %cst = arith.constant dense<0.000000e+00> : vector<128x128xf32>
    %2 = tpu.matmul %0, %1, %cst {dimension_numbers = #tpu.dot_dimension_numbers<[1], [0], [0], [1], [0, 0, 1, 1], [], []>} : vector<128x8xf32>, vector<8x128xf32>, vector<128x128xf32> -> vector<128x128xf32>
    %c0_3 = arith.constant 0 : index
    %c0_4 = arith.constant 0 : index
    %c0_5 = arith.constant 0 : index
    %3 = vector.load %arg7[%c0_3, %c0_4, %c0_5] : memref<3x1x128xf32, #tpu.memory_space<vmem>>, vector<1x1x128xf32>
    %4 = vector.shape_cast %3 : vector<1x1x128xf32> to vector<1x128xf32>
    %5 = vector.broadcast %4 : vector<1x128xf32> to vector<128x128xf32>
    %6 = arith.addf %2, %5 : vector<128x128xf32>
    %7 = math.tanh %6 : vector<128x128xf32>
    %c0_6 = arith.constant 0 : index
    %c0_7 = arith.constant 0 : index
    %c0_8 = arith.constant 0 : index
    %8 = vector.load %arg3[%c0_6, %c0_7, %c0_8] : memref<2x128x128xf32, #tpu.memory_space<vmem>>, vector<1x128x128xf32>
    %9 = vector.shape_cast %8 : vector<1x128x128xf32> to vector<128x128xf32>
    %cst_9 = arith.constant dense<0.000000e+00> : vector<128x128xf32>
    %10 = tpu.matmul %7, %9, %cst_9 {dimension_numbers = #tpu.dot_dimension_numbers<[1], [0], [0], [1], [0, 0, 1, 1], [], []>} : vector<128x128xf32>, vector<128x128xf32>, vector<128x128xf32> -> vector<128x128xf32>
    %c1 = arith.constant 1 : index
    %c0_10 = arith.constant 0 : index
    %c0_11 = arith.constant 0 : index
    %11 = vector.load %arg7[%c1, %c0_10, %c0_11] : memref<3x1x128xf32, #tpu.memory_space<vmem>>, vector<1x1x128xf32>
    %12 = vector.shape_cast %11 : vector<1x1x128xf32> to vector<1x128xf32>
    %13 = vector.broadcast %12 : vector<1x128xf32> to vector<128x128xf32>
    %14 = arith.addf %10, %13 : vector<128x128xf32>
    %15 = math.tanh %14 : vector<128x128xf32>
    %c1_12 = arith.constant 1 : index
    %c0_13 = arith.constant 0 : index
    %c0_14 = arith.constant 0 : index
    %16 = vector.load %arg3[%c1_12, %c0_13, %c0_14] : memref<2x128x128xf32, #tpu.memory_space<vmem>>, vector<1x128x128xf32>
    %17 = vector.shape_cast %16 : vector<1x128x128xf32> to vector<128x128xf32>
    %cst_15 = arith.constant dense<0.000000e+00> : vector<128x128xf32>
    %18 = tpu.matmul %15, %17, %cst_15 {dimension_numbers = #tpu.dot_dimension_numbers<[1], [0], [0], [1], [0, 0, 1, 1], [], []>} : vector<128x128xf32>, vector<128x128xf32>, vector<128x128xf32> -> vector<128x128xf32>
    %c2 = arith.constant 2 : index
    %c0_16 = arith.constant 0 : index
    %c0_17 = arith.constant 0 : index
    %19 = vector.load %arg7[%c2, %c0_16, %c0_17] : memref<3x1x128xf32, #tpu.memory_space<vmem>>, vector<1x1x128xf32>
    %20 = vector.shape_cast %19 : vector<1x1x128xf32> to vector<1x128xf32>
    %21 = vector.broadcast %20 : vector<1x128xf32> to vector<128x128xf32>
    %22 = arith.addf %18, %21 : vector<128x128xf32>
    %23 = math.tanh %22 : vector<128x128xf32>
    %c0_18 = arith.constant 0 : index
    %c0_19 = arith.constant 0 : index
    %24 = vector.load %arg4[%c0_18, %c0_19] : memref<128x256xf32, #tpu.memory_space<vmem>>, vector<128x256xf32>
    %cst_20 = arith.constant dense<0.000000e+00> : vector<128x256xf32>
    %25 = tpu.matmul %23, %24, %cst_20 {dimension_numbers = #tpu.dot_dimension_numbers<[1], [0], [0], [1], [0, 0, 1, 1], [], []>} : vector<128x128xf32>, vector<128x256xf32>, vector<128x256xf32> -> vector<128x256xf32>
    %26 = vector.extract_strided_slice %25 {offsets = [0, 0], sizes = [128, 128], strides = [1, 1]} : vector<128x256xf32> to vector<128x128xf32>
    %c0_21 = arith.constant 0 : index
    %c0_22 = arith.constant 0 : index
    %c0_23 = arith.constant 0 : index
    %27 = vector.load %arg8[%c0_21, %c0_22, %c0_23] : memref<2x1x128xf32, #tpu.memory_space<vmem>>, vector<1x1x128xf32>
    %28 = vector.shape_cast %27 : vector<1x1x128xf32> to vector<1x128xf32>
    %29 = vector.broadcast %28 : vector<1x128xf32> to vector<128x128xf32>
    %30 = arith.addf %26, %29 : vector<128x128xf32>
    %31 = math.tanh %30 : vector<128x128xf32>
    %c0_24 = arith.constant 0 : index
    %c0_25 = arith.constant 0 : index
    %32 = vector.load %arg5[%c0_24, %c0_25] : memref<128x128xf32, #tpu.memory_space<vmem>>, vector<128x128xf32>
    %cst_26 = arith.constant dense<0.000000e+00> : vector<128x128xf32>
    %33 = tpu.matmul %31, %32, %cst_26 {dimension_numbers = #tpu.dot_dimension_numbers<[1], [0], [0], [1], [0, 0, 1, 1], [], []>} : vector<128x128xf32>, vector<128x128xf32>, vector<128x128xf32> -> vector<128x128xf32>
    %34 = vector.extract_strided_slice %25 {offsets = [0, 128], sizes = [128, 128], strides = [1, 1]} : vector<128x256xf32> to vector<128x128xf32>
    %35 = arith.addf %33, %34 : vector<128x128xf32>
    %c1_27 = arith.constant 1 : index
    %c0_28 = arith.constant 0 : index
    %c0_29 = arith.constant 0 : index
    %36 = vector.load %arg8[%c1_27, %c0_28, %c0_29] : memref<2x1x128xf32, #tpu.memory_space<vmem>>, vector<1x1x128xf32>
    %37 = vector.shape_cast %36 : vector<1x1x128xf32> to vector<1x128xf32>
    %38 = vector.broadcast %37 : vector<1x128xf32> to vector<128x128xf32>
    %39 = arith.addf %35, %38 : vector<128x128xf32>
    %40 = math.tanh %39 : vector<128x128xf32>
    %c0_30 = arith.constant 0 : index
    %c0_31 = arith.constant 0 : index
    %41 = vector.load %arg6[%c0_30, %c0_31] : memref<1x128xf32, #tpu.memory_space<vmem>>, vector<1x128xf32>
    %cst_32 = arith.constant dense<0.000000e+00> : vector<1x128xf32>
    %42 = tpu.matmul %41, %40, %cst_32 {dimension_numbers = #tpu.dot_dimension_numbers<[1], [1], [0], [0], [0, 0, 1, 0], [], []>} : vector<1x128xf32>, vector<128x128xf32>, vector<1x128xf32> -> vector<1x128xf32>
    %c0_33 = arith.constant 0 : index
    %c0_34 = arith.constant 0 : index
    %43 = vector.load %arg9[%c0_33, %c0_34] : memref<1x1xf32, #tpu.memory_space<vmem>>, vector<1x1xf32>
    %44 = vector.broadcast %43 : vector<1x1xf32> to vector<1x128xf32>
    %45 = arith.addf %42, %44 : vector<1x128xf32>
    %c0_35 = arith.constant 0 : index
    %c0_36 = arith.constant 0 : index
    %c0_37 = arith.constant 0 : index
    %46 = vector.load %arg10[%c0_35, %c0_36, %c0_37] : memref<1x1x128xf32, #tpu.memory_space<vmem>>, vector<1x1x128xf32>
    %47 = vector.shape_cast %46 : vector<1x1x128xf32> to vector<1x128xf32>
    %48 = vector.shape_cast %45 : vector<1x128xf32> to vector<1x1x128xf32>
    tpu.vector_store %arg10[%c0_35, %c0_36, %c0_37], %48 {strides = array<i32>} : memref<1x1x128xf32, #tpu.memory_space<vmem>>, vector<1x1x128xf32>,
    return
  }
  func.func @transform_0(%arg0: i32) -> (i32, i32) {
    %c0_i32 = arith.constant 0 : i32
    %c0_i32_0 = arith.constant 0 : i32
    return %arg0, %c0_i32 : i32, i32
  }
  func.func @transform_1(%arg0: i32) -> (i32, i32) {
    %c0_i32 = arith.constant 0 : i32
    %c0_i32_0 = arith.constant 0 : i32
    %c0_i32_1 = arith.constant 0 : i32
    return %c0_i32, %c0_i32_0 : i32, i32
  }
  func.func @transform_2(%arg0: i32) -> (i32, i32, i32) {
    %c0_i32 = arith.constant 0 : i32
    %c0_i32_0 = arith.constant 0 : i32
    %c0_i32_1 = arith.constant 0 : i32
    %c0_i32_2 = arith.constant 0 : i32
    return %c0_i32, %c0_i32_0, %c0_i32_1 : i32, i32, i32
  }
  func.func @transform_3(%arg0: i32) -> (i32, i32) {
    %c0_i32 = arith.constant 0 : i32
    %c0_i32_0 = arith.constant 0 : i32
    %c0_i32_1 = arith.constant 0 : i32
    return %c0_i32, %c0_i32_0 : i32, i32
  }
  func.func @transform_4(%arg0: i32) -> (i32, i32) {
    %c0_i32 = arith.constant 0 : i32
    %c0_i32_0 = arith.constant 0 : i32
    %c0_i32_1 = arith.constant 0 : i32
    return %c0_i32, %c0_i32_0 : i32, i32
  }
  func.func @transform_5(%arg0: i32) -> (i32, i32) {
    %c0_i32 = arith.constant 0 : i32
    %c0_i32_0 = arith.constant 0 : i32
    %c0_i32_1 = arith.constant 0 : i32
    return %c0_i32, %c0_i32_0 : i32, i32
  }
  func.func @transform_6(%arg0: i32) -> (i32, i32, i32) {
    %c0_i32 = arith.constant 0 : i32
    %c0_i32_0 = arith.constant 0 : i32
    %c0_i32_1 = arith.constant 0 : i32
    %c0_i32_2 = arith.constant 0 : i32
    return %c0_i32, %c0_i32_0, %c0_i32_1 : i32, i32, i32
  }
  func.func @transform_7(%arg0: i32) -> (i32, i32, i32) {
    %c0_i32 = arith.constant 0 : i32
    %c0_i32_0 = arith.constant 0 : i32
    %c0_i32_1 = arith.constant 0 : i32
    %c0_i32_2 = arith.constant 0 : i32
    return %c0_i32, %c0_i32_0, %c0_i32_1 : i32, i32, i32
  }
  func.func @transform_8(%arg0: i32) -> (i32, i32) {
    %c0_i32 = arith.constant 0 : i32
    %c0_i32_0 = arith.constant 0 : i32
    %c0_i32_1 = arith.constant 0 : i32
    return %c0_i32, %c0_i32_0 : i32, i32
  }
  func.func @transform_9(%arg0: i32) -> (i32, i32, i32) {
    %c0_i32 = arith.constant 0 : i32
    %c0_i32_0 = arith.constant 0 : i32
    %c0_i32_1 = arith.constant 0 : i32
    return %arg0, %c0_i32, %c0_i32_0 : i32, i32, i32
  }
}

</mosaic_0001>

<bundles_post_ra>
// kernel: tpu_custom_call.1
= control target key start
LH: loop header
LB: loop body
LE: loop exit
PB: predicated region body
PF: predicated region fallthrough
CT: control target
= control target key end

     0   :  { %s2374_s0 = inlined_call_operand.vmem [shape: f32[128,8], index: 0, kind: input, shape index: {}]   ;;  %s2375_s1 = inlined_call_operand.vmem [shape: f32[8,128], index: 1, kind: input, shape index: {}]   ;;  %s2376_s2 = inlined_call_operand.hbm [shape: f32[2,128,128], index: 2, kind: input, shape index: {}]   ;;  %s2377_s3 = inlined_call_operand.hbm [shape: f32[128,256], index: 3, kind: input, shape index: {}]   ;;  %s2378_s4 = inlined_call_operand.vmem [shape: f32[128,128], index: 4, kind: input, shape index: {}]   ;;  %s2379_s5 = inlined_call_operand.vmem [shape: f32[1,128], index: 5, kind: input, shape index: {}]   ;;  %s2380_s6 = inlined_call_operand.vmem [shape: f32[3,1,128], index: 6, kind: input, shape index: {}]   ;;  %s2381_s7 = inlined_call_operand.vmem [shape: f32[2,1,128], index: 7, kind: input, shape index: {}]   ;;  %s2382_s8 = inlined_call_operand.<no memory space> [shape: f32[1,1], index: 8, kind: input, shape index: {}]   ;;  %s2383_s9 = inlined_call_operand.hbm [shape: f32[1,1,128], index: 9, kind: output, shape index: {}]  }
   0x1   :  { %v14_v0 = vstv %s2382_s8 }
   0x2   :  { %15 = vst [vmem:[#allocation2] sm:$0x1] %v14_v0 }
   0x3   :  { %16 = vsyncpa [#allocation4], 0 }
   0x4   :  { %17 = vsyncpa [#allocation7], 0 }
   0x5   :  { %18 = vsyncpa [#allocation5], 0  ;;  %s1978_s11 = smov [#allocation3]   ;;  %s1906_s15 = scalar_lea.hbm %s2376_s2, 4096 }
   0x6   :  { %s28_s12 = sshll.u32 %s1978_s11, 4  ;;  %p1907_p0 = scmp.ne.s32.totalorder %s2376_s2, %s1906_s15  ;;  %s29_s12 = int_to_ptr.vmem [resolvable:$true] %s28_s12 }
   0x7   :  { %p1910_p1 = scmp.lt.u32.totalorder %s1906_s15, %s2376_s2 }
   0x9   :  { %p1912_p2 = pnand %p1910_p1, %p1907_p0 }
   0xb   :  { %1915 = shalt.err (!%p1912_p2)
}
   0xc   :  { %s1916_s8 = scalar_lea.vmem %s29_s12, 4096  ;;  %p1921_p4 = scmp.lt.s32.totalorder %s29_s12, %s29_s12 }
   0xd   :  { %p1917_p3 = scmp.ne.s32.totalorder %s29_s12, %s1916_s8  ;;  %p1922_p5 = scmp.lt.s32.totalorder %s1916_s8, %s1916_s8 }
   0xf   :  { %p1923_p6 = por %p1922_p5, %p1921_p4 }
  0x11   :  { %p1924_p7 = pnand %p1923_p6, %p1917_p3 }
  0x13   :  { %1927 = shalt.err (!%p1924_p7)
}
  0x14   :  { %s1979_s20 = smov 128   ;;  %s1980_s21 = smov 8  }
  0x15   :  { %34 = dma.hbm_to_vmem [thread:$0]  %s2376_s2, 4096, %s29_s12, [#allocation4], %s1979_s20, %s1979_s20, %s1980_s21  }
  0x16   :  { %s1981_s24 = smov [#allocation6]   ;;  %s1928_s28 = scalar_lea.hbm %s2377_s3, 4096 }
  0x17   :  { %s40_s25 = sshll.u32 %s1981_s24, 4  ;;  %p1929_p8 = scmp.ne.s32.totalorder %s2377_s3, %s1928_s28  ;;  %s41_s25 = int_to_ptr.vmem [resolvable:$true] %s40_s25 }
  0x18   :  { %p1932_p9 = scmp.lt.u32.totalorder %s1928_s28, %s2377_s3 }
  0x1a   :  { %p1934_p10 = pnand %p1932_p9, %p1929_p8 }
  0x1c   :  { %1937 = shalt.err (!%p1934_p10)
}
  0x1d   :  { %s1938_s13 = scalar_lea.vmem %s41_s25, 4096  ;;  %p1943_p12 = scmp.lt.s32.totalorder %s41_s25, %s41_s25 }
  0x1e   :  { %p1939_p11 = scmp.ne.s32.totalorder %s41_s25, %s1938_s13  ;;  %p1944_p13 = scmp.lt.s32.totalorder %s1938_s13, %s1938_s13 }
  0x20   :  { %p1945_p0 = por %p1944_p13, %p1943_p12 }
  0x22   :  { %p1946_p1 = pnand %p1945_p0, %p1939_p11 }
  0x24   :  { %1949 = shalt.err (!%p1946_p1)
}
  0x25   :  { %s1982_s2 = smov 256   ;;  %s1983_s12 = smov 16  }
  0x26   :  { %46 = dma.hbm_to_vmem [thread:$0]  %s2377_s3, 4096, %s41_s25, [#allocation7], %s1982_s2, %s1982_s2, %s1983_s12  }
  0x27   :  { %1972 = dma.done.wait [#allocation4], 4096  }
  0x28   :  { %1973 = vsyncadd [#allocation4], 4294963200 }
  0x29   :  { %1974 = dma.done.wait [#allocation7], 4096  }
  0x2a   :  { %1975 = vsyncadd [#allocation7], 4294963200  ;;  %vm87_vm0 = vcmask 64512   ;;  %v79_v1 = vld [vmem:[%s2375_s1] sm:$0xff]  ;;  %v64_v3 = vld [vmem:[%s2374_s0 + $0x8] sm:$0xff]  ;;  %vm1986_vm1 = vmmov 0  }
  0x2b   :  { %v63_v2 = vld [vmem:[%s2374_s0] sm:$0xff]  ;;  %1353 = vmatprep.subr.mxu1 %v79_v1  ;;  %v65_v4 = vld [vmem:[%s2374_s0 + $0x10] sm:$0xff]  ;;  %v66_v5 = vld [vmem:[%s2374_s0 + $0x18] sm:$0xff]  ;;  %s1988_s14 = smov [#allocation8]  }
  0x2c   :  { %1355 = vmatprep.mubr.msk.f32.mxu1 %vm87_vm0, %v63_v2  ;;  %1354 = vmatpush3.msra.mxu1 %v79_v1  ;;  %v67_v6 = vld [vmem:[%s2374_s0 + $0x20] sm:$0xff]  ;;  %v298_v8 = vld [vmem:[#allocation3 + $0x8] sm:$0xff]  ;;  %v299_v9 = vld [vmem:[#allocation3 + $0x10] sm:$0xff]  ;;  %s1189_s15 = sshll.u32 %s1988_s14, 4  ;;  %s1190_s15 = int_to_ptr.vmem [resolvable:$true] %s1189_s15 }
  0x2d   :  { %1356 = vmatmul.mubr.msk.f32.vlgmr.msra.gmra.mrb[0].mxu1 %vm87_vm0, %v64_v3  ;;  %v297_v7 = vld [vmem:[#allocation3] sm:$0xff]  ;;  %v300_v10 = vld [vmem:[#allocation3 + $0x18] sm:$0xff]  ;;  %v302_v15 = vld [vmem:[#allocation3 + $0x28] sm:$0xff]  ;;  %s1950_s16 = scalar_lea.vmem %s1190_s15, 16  ;;  %s1954_s17 = scalar_lea.vmem %s1190_s15, 32 }
  0x2e   :  { %1358 = vmatprep.mubr.msk.f32.mxu1 %vm87_vm0, %v65_v4  ;;  %v1582_v11 = vpack.c.bf16 %v298_v8, %v297_v7  ;;  %v1586_v12 = vpack.c.bf16 %v300_v10, %v299_v9  ;;  %v68_v13 = vld [vmem:[%s2374_s0 + $0x28] sm:$0xff]  ;;  %v69_v16 = vld [vmem:[%s2374_s0 + $0x30] sm:$0xff]  ;;  %v70_v18 = vld [vmem:[%s2374_s0 + $0x38] sm:$0xff]  ;;  %p1951_p2 = scmp.ne.s32.totalorder %s1190_s15, %s1950_s16  ;;  %p1955_p3 = scmp.lt.s32.totalorder %s1190_s15, %s1190_s15 }
  0x2f   :  { %v301_v14 = vld [vmem:[#allocation3 + $0x20] sm:$0xff]  ;;  %v303_v19 = vld [vmem:[#allocation3 + $0x30] sm:$0xff]  ;;  %v304_v20 = vld [vmem:[#allocation3 + $0x38] sm:$0xff]  ;;  %p1956_p4 = scmp.lt.s32.totalorder %s1954_s17, %s1950_s16 }
  0x30   :  { %1583 = vmatprep.subr.bf16.mxu0 %v1582_v11  ;;  %v1590_v17 = vpack.c.bf16 %v302_v15, %v301_v14  ;;  %v71_v21 = vld [vmem:[%s2374_s0 + $0x40] sm:$0xff]  ;;  %v1594_v22 = vpack.c.bf16 %v304_v20, %v303_v19  ;;  %v72_v23 = vld [vmem:[%s2374_s0 + $0x48] sm:$0xff]  ;;  %v73_v24 = vld [vmem:[%s2374_s0 + $0x50] sm:$0xff] }
  0x31   :  { %1359 = vmatmul.mubr.msk.f32.gmra.mrb[2].mxu1 %vm87_vm0, %v66_v5  ;;  %1585 = vmatpush3.bf16.msra.mxu0 %v1582_v11  ;;  %v74_v25 = vld [vmem:[%s2374_s0 + $0x58] sm:$0xff]  ;;  %v75_v26 = vld [vmem:[%s2374_s0 + $0x60] sm:$0xff]  ;;  %v76_v27 = vld [vmem:[%s2374_s0 + $0x68] sm:$0xff]  ;;  %p1957_p5 = por %p1956_p4, %p1955_p3 }
  0x32   :  { %1361 = vmatprep.mubr.msk.f32.mxu1 %vm87_vm0, %v67_v6  ;;  %1587 = vmatprep.subr.bf16.mxu0 %v1586_v12  ;;  %v77_v28 = vld [vmem:[%s2374_s0 + $0x70] sm:$0xff]  ;;  %v78_v29 = vld [vmem:[%s2374_s0 + $0x78] sm:$0xff]  ;;  %v305_v30 = vld [vmem:[#allocation3 + $0x40] sm:$0xff] }
  0x33   :  { %v306_v31 = vld [vmem:[#allocation3 + $0x48] sm:$0xff]  ;;  %v307_v33 = vld [vmem:[#allocation3 + $0x50] sm:$0xff]  ;;  %v308_v34 = vld [vmem:[#allocation3 + $0x58] sm:$0xff]  ;;  %p1958_p6 = pnand %p1957_p5, %p1951_p2 }
  0x34   :  { %v1598_v32 = vpack.c.bf16 %v306_v31, %v305_v30  ;;  %v1602_v35 = vpack.c.bf16 %v308_v34, %v307_v33  ;;  %v309_v36 = vld [vmem:[#allocation3 + $0x60] sm:$0xff]  ;;  %v310_v37 = vld [vmem:[#allocation3 + $0x68] sm:$0xff]  ;;  %v311_v39 = vld [vmem:[#allocation3 + $0x70] sm:$0xff] }
  0x35   :  { %1362 = vmatmul.mubr.msk.f32.gmra.mrb[4].mxu1 %vm87_vm0, %v68_v13  ;;  %1589 = vmatpush3.bf16.msra.mxu0 %v1586_v12  ;;  %v1606_v38 = vpack.c.bf16 %v310_v37, %v309_v36  ;;  %v312_v40 = vld [vmem:[#allocation3 + $0x78] sm:$0xff]  ;;  %v483_v42 = vld [vmem:[#allocation3 + $0x80] sm:$0xff]  ;;  %v484_v43 = vld [vmem:[#allocation3 + $0x88] sm:$0xff] }
  0x36   :  { %1364 = vmatprep.mubr.msk.f32.mxu1 %vm87_vm0, %v69_v16  ;;  %1591 = vmatprep.subr.bf16.mxu0 %v1590_v17  ;;  %v1610_v41 = vpack.c.bf16 %v312_v40, %v311_v39  ;;  %v1614_v44 = vpack.c.bf16 %v484_v43, %v483_v42  ;;  %v2136_v45 = vld [vmem:[%s2380_s6] ss:$0 sm:$0xff]  ;;  %v485_v58 = vld [vmem:[#allocation3 + $0x90] sm:$0xff]  ;;  %v487_v3 = vld [vmem:[#allocation3 + $0xa0] sm:$0xff] }
  0x37   :  { %v486_v59 = vld [vmem:[#allocation3 + $0x98] sm:$0xff]  ;;  %v488_v4 = vld [vmem:[#allocation3 + $0xa8] sm:$0xff]  ;;  %v489_v12 = vld [vmem:[#allocation3 + $0xb0] sm:$0xff] }
  0x38   :  { %v1618_v1 = vpack.c.bf16 %v486_v59, %v485_v58  ;;  %v1622_v11 = vpack.c.bf16 %v488_v4, %v487_v3  ;;  %v490_v13 = vld [vmem:[#allocation3 + $0xb8] sm:$0xff]  ;;  %v491_v39 = vld [vmem:[#allocation3 + $0xc0] sm:$0xff]  ;;  %v492_v40 = vld [vmem:[#allocation3 + $0xc8] sm:$0xff] }
  0x39   :  { %1365 = vmatmul.mubr.msk.f32.gmra.mrb[6].mxu1 %vm87_vm0, %v70_v18  ;;  %1593 = vmatpush3.bf16.msra.mxu0 %v1590_v17  ;;  %v1626_v20 = vpack.c.bf16 %v490_v13, %v489_v12  ;;  %v493_v42 = vld [vmem:[#allocation3 + $0xd0] sm:$0xff]  ;;  %v494_v43 = vld [vmem:[#allocation3 + $0xd8] sm:$0xff]  ;;  %v681_v4 = vld [vmem:[#allocation6 + $0x68] sm:$0xff] }
  0x3a   :  { %1367 = vmatprep.mubr.msk.f32.mxu1 %vm87_vm0, %v71_v21  ;;  %1595 = vmatprep.subr.bf16.mxu0 %v1594_v22  ;;  %v678_v3 = vld [vmem:[#allocation6 + $0x50] sm:$0xff] }
  0x3d   :  { %1368 = vmatmul.mubr.msk.f32.gmra.mrb[8].mxu1 %vm87_vm0, %v72_v23  ;;  %1597 = vmatpush3.bf16.msra.mxu0 %v1594_v22 }
  0x3e   :  { %1370 = vmatprep.mubr.msk.f32.mxu1 %vm87_vm0, %v73_v24  ;;  %1599 = vmatprep.subr.bf16.mxu0 %v1598_v32 }
  0x41   :  { %1371 = vmatmul.mubr.msk.f32.gmra.mrb[10].mxu1 %vm87_vm0, %v74_v25  ;;  %1601 = vmatpush3.bf16.msra.mxu0 %v1598_v32 }
  0x42   :  { %1373 = vmatprep.mubr.msk.f32.mxu1 %vm87_vm0, %v75_v26  ;;  %1603 = vmatprep.subr.bf16.mxu0 %v1602_v35 }
  0x45   :  { %1374 = vmatmul.mubr.msk.f32.gmra.mrb[12].mxu1 %vm87_vm0, %v76_v27  ;;  %1605 = vmatpush3.bf16.msra.mxu0 %v1602_v35 }
  0x46   :  { %1376 = vmatprep.mubr.msk.f32.mxu1 %vm87_vm0, %v77_v28  ;;  %1607 = vmatprep.subr.bf16.mxu0 %v1606_v38 }
  0x49   :  { %1377 = vmatmul.mubr.msk.f32.gmra.mrb[14].mxu1 %vm87_vm0, %v78_v29  ;;  %1609 = vmatpush3.bf16.msra.mxu0 %v1606_v38 }
  0x4a   :  { %1611 = vmatprep.subr.bf16.mxu0 %v1610_v41 }
  0x4d   :  { %1613 = vmatpush3.bf16.msra.mxu0 %v1610_v41  ;;  %v1630_v41 = vpack.c.bf16 %v492_v40, %v491_v39 }
  0x4e   :  { %1615 = vmatprep.subr.bf16.mxu0 %v1614_v44 }
 0x100   :  { %v1357_v46 = vpop.f32.mrb[0].mxu1 }
 0x101   :  { %v208_v47 = vadd.f32 %v1357_v46, %v2136_v45  ;;  %v202_v48 = vpop.f32.mrb[1].mxu1  ;;  %v496_v46 = vld [vmem:[#allocation3 + $0xe8] sm:$0xff] }
 0x102   :  { %v203_v49 = vadd.f32 %v2136_v45, %v202_v48  ;;  %v497_v48 = vld [vmem:[#allocation3 + $0xf0] sm:$0xff] }
 0x104   :  { %1746 = vtanh.f32 %v203_v49  ;;  %v1360_v50 = vpop.f32.mrb[2].mxu1  ;;  %v498_v49 = vld [vmem:[#allocation3 + $0xf8] sm:$0xff] }
 0x105   :  { %1748 = vtanh.f32 %v208_v47  ;;  %v218_v51 = vadd.f32 %v1360_v50, %v2136_v45  ;;  %v212_v52 = vpop.f32.mrb[3].mxu1  ;;  %v1642_v50 = vpack.c.bf16 %v498_v49, %v497_v48 }
 0x106   :  { %v213_v53 = vadd.f32 %v2136_v45, %v212_v52  ;;  %v671_v52 = vld [vmem:[#allocation6 + $0x18] sm:$0xff] }
 0x107   :  { %1750 = vtanh.f32 %v218_v51  ;;  %v669_v51 = vld [vmem:[#allocation6 + $0x8] sm:$0xff] }
 0x108   :  { %1752 = vtanh.f32 %v213_v53  ;;  %v1363_v54 = vpop.f32.mrb[4].mxu1  ;;  %v668_v53 = vld [vmem:[#allocation6] sm:$0xff] }
 0x109   :  { %v228_v55 = vadd.f32 %v1363_v54, %v2136_v45  ;;  %v222_v56 = vpop.f32.mrb[5].mxu1  ;;  %v1646_v54 = vpack.c.bf16 %v671_v52, %v669_v51 }
 0x10a   :  { %v223_v57 = vadd.f32 %v2136_v45, %v222_v56  ;;  %v673_v56 = vld [vmem:[#allocation6 + $0x28] sm:$0xff] }
 0x10b   :  { %1754 = vtanh.f32 %v228_v55  ;;  %v670_v55 = vld [vmem:[#allocation6 + $0x10] sm:$0xff]  ;;  %1647 = vmatprep.subr.bf16.mxu1 %v1646_v54 }
 0x10c   :  { %1756 = vtanh.f32 %v223_v57  ;;  %v1366_v60 = vpop.f32.mrb[6].mxu1  ;;  %v675_v57 = vld [vmem:[#allocation6 + $0x38] sm:$0xff]  ;;  %v1648_v58 = vpack.c.bf16 %v670_v55, %v668_v53 }
 0x10d   :  { %v238_v61 = vadd.f32 %v1366_v60, %v2136_v45  ;;  %v232_v62 = vpop.f32.mrb[7].mxu1  ;;  %v1650_v59 = vpack.c.bf16 %v675_v57, %v673_v56  ;;  %v672_v60 = vld [vmem:[#allocation6 + $0x20] sm:$0xff] }
 0x10e   :  { %v1747_v63 = vpop.eup %1746  ;;  %v233_v0 = vadd.f32 %v2136_v45, %v232_v62  ;;  %v677_v62 = vld [vmem:[#allocation6 + $0x48] sm:$0xff]  ;;  %1649 = vmatpush1.bf16.msra.mxu1 %v1648_v58 }
 0x10f   :  { %v1749_v2 = vpop.eup %1748  ;;  %1411 = vmatprep.mubr.f32.mxu0 %v1747_v63  ;;  %1758 = vtanh.f32 %v238_v61  ;;  %v674_v61 = vld [vmem:[#allocation6 + $0x30] sm:$0xff]  ;;  %v679_v63 = vld [vmem:[#allocation6 + $0x58] sm:$0xff]  ;;  %1651 = vmatprep.subr.bf16.mxu1 %v1650_v59 }
 0x110   :  { %1412 = vmatmul.mubr.f32.vlgmr.msra.gmra.mrb[0].mxu0 %v1749_v2  ;;  %1760 = vtanh.f32 %v233_v0  ;;  %v1369_v5 = vpop.f32.mrb[8].mxu1  ;;  %v1652_v0 = vpack.c.bf16 %v674_v61, %v672_v60  ;;  %v676_v2 = vld [vmem:[#allocation6 + $0x40] sm:$0xff] }
 0x111   :  { %v1751_v6 = vpop.eup %1750  ;;  %v248_v7 = vadd.f32 %v1369_v5, %v2136_v45  ;;  %v242_v8 = vpop.f32.mrb[9].mxu1  ;;  %1617 = vmatpush3.bf16.msra.mxu0 %v1614_v44  ;;  %v1634_v44 = vpack.c.bf16 %v494_v43, %v493_v42  ;;  %v683_v5 = vld [vmem:[#allocation6 + $0x78] sm:$0xff] }
 0x112   :  { %v1753_v9 = vpop.eup %1752  ;;  %v243_v10 = vadd.f32 %v2136_v45, %v242_v8  ;;  %1619 = vmatprep.subr.bf16.mxu0 %v1618_v1  ;;  %1653 = vmatpush1.bf16.msra.mxu1 %v1652_v0  ;;  %v680_v8 = vld [vmem:[#allocation6 + $0x60] sm:$0xff]  ;;  %v686_v0 = vld [vmem:[#allocation6 + $0x90] sm:$0xff] }
 0x113   :  { %1414 = vmatprep.mubr.f32.mxu0 %v1753_v9  ;;  %1762 = vtanh.f32 %v248_v7  ;;  %v1658_v7 = vpack.c.bf16 %v683_v5, %v681_v4  ;;  %v682_v9 = vld [vmem:[#allocation6 + $0x70] sm:$0xff]  ;;  %v688_v5 = vld [vmem:[#allocation6 + $0xa0] sm:$0xff] }
 0x114   :  { %1415 = vmatmul.mubr.f32.gmra.mrb[2].mxu0 %v1751_v6  ;;  %1764 = vtanh.f32 %v243_v10  ;;  %v1372_v14 = vpop.f32.mrb[10].mxu1  ;;  %v1656_v6 = vpack.c.bf16 %v678_v3, %v676_v2  ;;  %v685_v10 = vld [vmem:[#allocation6 + $0x88] sm:$0xff]  ;;  %v1660_v12 = vpack.c.bf16 %v682_v9, %v680_v8  ;;  %v691_v3 = vld [vmem:[#allocation6 + $0xb8] sm:$0xff] }
 0x115   :  { %v1755_v15 = vpop.eup %1754  ;;  %v258_v16 = vadd.f32 %v1372_v14, %v2136_v45  ;;  %v252_v17 = vpop.f32.mrb[11].mxu1  ;;  %1621 = vmatpush3.bf16.msra.mxu0 %v1618_v1  ;;  %v1654_v1 = vpack.c.bf16 %v679_v63, %v677_v62  ;;  %v2157_v14 = vld [vmem:[%s2380_s6 + $0x1] ss:$0 sm:$0xff]  ;;  %v689_v2 = vld [vmem:[#allocation6 + $0xa8] sm:$0xff]  ;;  %v695_v9 = vld [vmem:[#allocation6 + $0xd8] sm:$0xff] }
 0x116   :  { %v1757_v18 = vpop.eup %1756  ;;  %v253_v19 = vadd.f32 %v2136_v45, %v252_v17  ;;  %1623 = vmatprep.subr.bf16.mxu0 %v1622_v11  ;;  %v684_v63 = vld [vmem:[#allocation6 + $0x80] sm:$0xff]  ;;  %v1666_v4 = vpack.c.bf16 %v691_v3, %v689_v2  ;;  %v693_v8 = vld [vmem:[#allocation6 + $0xc8] sm:$0xff] }
 0x117   :  { %1417 = vmatprep.mubr.f32.mxu0 %v1757_v18  ;;  %1766 = vtanh.f32 %v258_v16  ;;  %1655 = vmatprep.subr.bf16.mxu1 %v1654_v1  ;;  %v1664_v1 = vpack.c.bf16 %v686_v0, %v684_v63 }
 0x118   :  { %1418 = vmatmul.mubr.f32.gmra.mrb[4].mxu0 %v1755_v15  ;;  %1768 = vtanh.f32 %v253_v19  ;;  %v1375_v21 = vpop.f32.mrb[12].mxu1  ;;  %1657 = vmatpush1.bf16.msra.mxu1 %v1656_v6  ;;  %v690_v6 = vld [vmem:[#allocation6 + $0xb0] sm:$0xff] }
 0x119   :  { %v1759_v22 = vpop.eup %1758  ;;  %v268_v23 = vadd.f32 %v1375_v21, %v2136_v45  ;;  %v262_v24 = vpop.f32.mrb[13].mxu1  ;;  %1625 = vmatpush3.bf16.msra.mxu0 %v1622_v11  ;;  %v687_v11 = vld [vmem:[#allocation6 + $0x98] sm:$0xff]  ;;  %1659 = vmatprep.subr.bf16.mxu1 %v1658_v7  ;;  %v1668_v7 = vpack.c.bf16 %v690_v6, %v688_v5 }
 0x11a   :  { %v1761_v25 = vpop.eup %1760  ;;  %v263_v26 = vadd.f32 %v2136_v45, %v262_v24  ;;  %1627 = vmatprep.subr.bf16.mxu0 %v1626_v20  ;;  %v1662_v13 = vpack.c.bf16 %v687_v11, %v685_v10  ;;  %v1670_v10 = vpack.c.bf16 %v695_v9, %v693_v8  ;;  %v692_v11 = vld [vmem:[#allocation6 + $0xc0] sm:$0xff] }
 0x11b   :  { %1420 = vmatprep.mubr.f32.mxu0 %v1761_v25  ;;  %1770 = vtanh.f32 %v268_v23 }
 0x11c   :  { %1421 = vmatmul.mubr.f32.gmra.mrb[6].mxu0 %v1759_v22  ;;  %1772 = vtanh.f32 %v263_v26  ;;  %v1378_v27 = vpop.f32.mrb[14].mxu1  ;;  %1661 = vmatpush1.bf16.msra.mxu1 %v1660_v12  ;;  %v694_v12 = vld [vmem:[#allocation6 + $0xd0] sm:$0xff] }
 0x11d   :  { %v1763_v28 = vpop.eup %1762  ;;  %v278_v29 = vadd.f32 %v1378_v27, %v2136_v45  ;;  %v272_v30 = vpop.f32.mrb[15].mxu1  ;;  %1629 = vmatpush3.bf16.msra.mxu0 %v1626_v20  ;;  %1663 = vmatprep.subr.bf16.mxu1 %v1662_v13  ;;  %v1672_v13 = vpack.c.bf16 %v694_v12, %v692_v11 }
 0x11e   :  { %v1765_v31 = vpop.eup %1764  ;;  %v273_v32 = vadd.f32 %v2136_v45, %v272_v30  ;;  %1631 = vmatprep.subr.bf16.mxu0 %v1630_v41  ;;  %v495_v45 = vld [vmem:[#allocation3 + $0xe0] sm:$0xff] }
 0x11f   :  { %1423 = vmatprep.mubr.f32.mxu0 %v1765_v31  ;;  %1774 = vtanh.f32 %v278_v29  ;;  %v1638_v47 = vpack.c.bf16 %v496_v46, %v495_v45 }
 0x120   :  { %1424 = vmatmul.mubr.f32.gmra.mrb[8].mxu0 %v1763_v28  ;;  %1776 = vtanh.f32 %v273_v32  ;;  %1665 = vmatpush1.bf16.msra.mxu1 %v1664_v1 }
 0x121   :  { %v1767_v33 = vpop.eup %1766  ;;  %1633 = vmatpush3.bf16.msra.mxu0 %v1630_v41  ;;  %1667 = vmatprep.subr.bf16.mxu1 %v1666_v4 }
 0x122   :  { %v1769_v34 = vpop.eup %1768  ;;  %1635 = vmatprep.subr.bf16.mxu0 %v1634_v44 }
 0x123   :  { %1426 = vmatprep.mubr.f32.mxu0 %v1769_v34 }
 0x124   :  { %1427 = vmatmul.mubr.f32.gmra.mrb[10].mxu0 %v1767_v33  ;;  %1669 = vmatpush1.bf16.msra.mxu1 %v1668_v7 }
 0x125   :  { %v1771_v35 = vpop.eup %1770  ;;  %1637 = vmatpush3.bf16.msra.mxu0 %v1634_v44  ;;  %1671 = vmatprep.subr.bf16.mxu1 %v1670_v10 }
 0x126   :  { %v1773_v36 = vpop.eup %1772  ;;  %1639 = vmatprep.subr.bf16.mxu0 %v1638_v47 }
 0x127   :  { %1429 = vmatprep.mubr.f32.mxu0 %v1773_v36 }
 0x128   :  { %1430 = vmatmul.mubr.f32.gmra.mrb[12].mxu0 %v1771_v35  ;;  %1673 = vmatpush1.bf16.msra.mxu1 %v1672_v13 }
 0x129   :  { %v1775_v37 = vpop.eup %1774  ;;  %1641 = vmatpush3.bf16.msra.mxu0 %v1638_v47 }
 0x12a   :  { %v1777_v38 = vpop.eup %1776  ;;  %1643 = vmatprep.subr.bf16.mxu0 %v1642_v50 }
 0x12b   :  { %1432 = vmatprep.mubr.f32.mxu0 %v1777_v38 }
 0x12c   :  { %1433 = vmatmul.mubr.f32.gmra.mrb[14].mxu0 %v1775_v37 }
 0x12d   :  { %1645 = vmatpush3.bf16.msra.mxu0 %v1642_v50 }
 0x1e3   :  { %v1413_v15 = vpop.f32.mrb[0].mxu0 }
 0x1e4   :  { %v393_v16 = vadd.f32 %v1413_v15, %v2157_v14  ;;  %v387_v17 = vpop.f32.mrb[1].mxu0  ;;  %v699_v15 = vld [vmem:[#allocation6 + $0xf8] sm:$0xff] }
 0x1e5   :  { %v388_v18 = vadd.f32 %v2157_v14, %v387_v17  ;;  %v696_v17 = vld [vmem:[#allocation6 + $0xe0] sm:$0xff] }
 0x1e7   :  { %1778 = vtanh.f32 %v388_v18  ;;  %v1416_v19 = vpop.f32.mrb[2].mxu0  ;;  %v698_v18 = vld [vmem:[#allocation6 + $0xf0] sm:$0xff] }
 0x1e8   :  { %1780 = vtanh.f32 %v393_v16  ;;  %v403_v20 = vadd.f32 %v1416_v19, %v2157_v14  ;;  %v397_v21 = vpop.f32.mrb[3].mxu0  ;;  %v1676_v19 = vpack.c.bf16 %v698_v18, %v696_v17  ;;  %v908_v18 = vld [vmem:[%s2378_s4 + $0x40] sm:$0xff] }
 0x1e9   :  { %v398_v22 = vadd.f32 %v2157_v14, %v397_v21  ;;  %v900_v21 = vld [vmem:[%s2378_s4] sm:$0xff] }
 0x1ea   :  { %1782 = vtanh.f32 %v403_v20  ;;  %v1984_v20 = vmov 0.0  }
 0x1eb   :  { %1784 = vtanh.f32 %v398_v22  ;;  %v1419_v23 = vpop.f32.mrb[4].mxu0  ;;  %764 = vmatprep.mubr.f32.mxu1 %v1984_v20  ;;  %v901_v22 = vld [vmem:[%s2378_s4 + $0x8] sm:$0xff] }
 0x1ec   :  { %v413_v24 = vadd.f32 %v1419_v23, %v2157_v14  ;;  %v407_v25 = vpop.f32.mrb[5].mxu0  ;;  %v902_v23 = vld [vmem:[%s2378_s4 + $0x10] sm:$0xff] }
 0x1ed   :  { %v408_v26 = vadd.f32 %v2157_v14, %v407_v25  ;;  %v903_v25 = vld [vmem:[%s2378_s4 + $0x18] sm:$0xff] }
 0x1ee   :  { %1786 = vtanh.f32 %v413_v24  ;;  %v1678_v24 = vpack.c.bf16 %v901_v22, %v900_v21  ;;  %v910_v22 = vld [vmem:[%s2378_s4 + $0x50] sm:$0xff] }
 0x1ef   :  { %1788 = vtanh.f32 %v408_v26  ;;  %v1422_v27 = vpop.f32.mrb[6].mxu0  ;;  %v1682_v26 = vpack.c.bf16 %v903_v25, %v902_v23  ;;  %v911_v23 = vld [vmem:[%s2378_s4 + $0x58] sm:$0xff]  ;;  %v912_v25 = vld [vmem:[%s2378_s4 + $0x60] sm:$0xff] }
 0x1f0   :  { %v423_v28 = vadd.f32 %v1422_v27, %v2157_v14  ;;  %v417_v29 = vpop.f32.mrb[7].mxu0  ;;  %v904_v27 = vld [vmem:[%s2378_s4 + $0x20] sm:$0xff]  ;;  %1679 = vmatprep.subr.bf16.mxu0 %v1678_v24 }
 0x1f1   :  { %v1779_v30 = vpop.eup %1778  ;;  %v418_v31 = vadd.f32 %v2157_v14, %v417_v29 }
 0x1f2   :  { %v1781_v32 = vpop.eup %1780  ;;  %1467 = vmatprep.mubr.f32.mxu0 %v1779_v30  ;;  %1790 = vtanh.f32 %v423_v28  ;;  %v905_v28 = vld [vmem:[%s2378_s4 + $0x28] sm:$0xff]  ;;  %v906_v30 = vld [vmem:[%s2378_s4 + $0x30] sm:$0xff] }
 0x1f3   :  { %1468 = vmatmul.mubr.f32.vlgmr.msra.gmra.mrb[16].mxu0 %v1781_v32  ;;  %1792 = vtanh.f32 %v418_v31  ;;  %v1425_v33 = vpop.f32.mrb[8].mxu0  ;;  %v1686_v29 = vpack.c.bf16 %v905_v28, %v904_v27  ;;  %v907_v31 = vld [vmem:[%s2378_s4 + $0x38] sm:$0xff]  ;;  %v914_v28 = vld [vmem:[%s2378_s4 + $0x70] sm:$0xff] }
 0x1f4   :  { %v1783_v34 = vpop.eup %1782  ;;  %v433_v35 = vadd.f32 %v1425_v33, %v2157_v14  ;;  %v427_v36 = vpop.f32.mrb[9].mxu0  ;;  %1681 = vmatpush3.bf16.msra.mxu0 %v1678_v24  ;;  %v1690_v32 = vpack.c.bf16 %v907_v31, %v906_v30  ;;  %v2203_v33 = vld [vmem:[%s2380_s6 + $0x2] ss:$0 sm:$0xff]  ;;  %v1698_v24 = vpack.c.bf16 %v911_v23, %v910_v22  ;;  %v2263_v31 = vld [vmem:[%s2381_s7] ss:$0 sm:$0xff] }
 0x1f5   :  { %v1785_v37 = vpop.eup %1784  ;;  %v428_v38 = vadd.f32 %v2157_v14, %v427_v36  ;;  %1683 = vmatprep.subr.bf16.mxu0 %v1682_v26 }
 0x1f6   :  { %1470 = vmatprep.mubr.f32.mxu0 %v1785_v37  ;;  %1794 = vtanh.f32 %v433_v35 }
 0x1f7   :  { %1471 = vmatmul.mubr.f32.gmra.mrb[18].mxu0 %v1783_v34  ;;  %1796 = vtanh.f32 %v428_v38  ;;  %v1428_v39 = vpop.f32.mrb[10].mxu0 }
 0x1f8   :  { %v1787_v40 = vpop.eup %1786  ;;  %v443_v41 = vadd.f32 %v1428_v39, %v2157_v14  ;;  %v437_v42 = vpop.f32.mrb[11].mxu0  ;;  %1685 = vmatpush3.bf16.msra.mxu0 %v1682_v26  ;;  %v913_v26 = vld [vmem:[%s2378_s4 + $0x68] sm:$0xff] }
 0x1f9   :  { %v1789_v43 = vpop.eup %1788  ;;  %v438_v44 = vadd.f32 %v2157_v14, %v437_v42  ;;  %1687 = vmatprep.subr.bf16.mxu0 %v1686_v29  ;;  %v1702_v27 = vpack.c.bf16 %v913_v26, %v912_v25 }
 0x1fa   :  { %1473 = vmatprep.mubr.f32.mxu0 %v1789_v43  ;;  %1798 = vtanh.f32 %v443_v41 }
 0x1fb   :  { %1474 = vmatmul.mubr.f32.gmra.mrb[20].mxu0 %v1787_v40  ;;  %1800 = vtanh.f32 %v438_v44  ;;  %v1431_v45 = vpop.f32.mrb[12].mxu0 }
 0x1fc   :  { %v1791_v46 = vpop.eup %1790  ;;  %v453_v47 = vadd.f32 %v1431_v45, %v2157_v14  ;;  %v447_v48 = vpop.f32.mrb[13].mxu0  ;;  %1689 = vmatpush3.bf16.msra.mxu0 %v1686_v29  ;;  %v915_v29 = vld [vmem:[%s2378_s4 + $0x78] sm:$0xff] }
 0x1fd   :  { %v1793_v49 = vpop.eup %1792  ;;  %v448_v50 = vadd.f32 %v2157_v14, %v447_v48  ;;  %1691 = vmatprep.subr.bf16.mxu0 %v1690_v32  ;;  %v1706_v30 = vpack.c.bf16 %v915_v29, %v914_v28 }
 0x1fe   :  { %1476 = vmatprep.mubr.f32.mxu0 %v1793_v49  ;;  %1802 = vtanh.f32 %v453_v47 }
 0x1ff   :  { %1477 = vmatmul.mubr.f32.gmra.mrb[22].mxu0 %v1791_v46  ;;  %1804 = vtanh.f32 %v448_v50  ;;  %v1434_v51 = vpop.f32.mrb[14].mxu0 }
 0x200   :  { %v1795_v52 = vpop.eup %1794  ;;  %v463_v53 = vadd.f32 %v1434_v51, %v2157_v14  ;;  %v457_v54 = vpop.f32.mrb[15].mxu0  ;;  %1693 = vmatpush3.bf16.msra.mxu0 %v1690_v32 }
 0x201   :  { %v1797_v55 = vpop.eup %1796  ;;  %v458_v56 = vadd.f32 %v2157_v14, %v457_v54  ;;  %v697_v14 = vld [vmem:[#allocation6 + $0xe8] sm:$0xff] }
 0x202   :  { %1479 = vmatprep.mubr.f32.mxu0 %v1797_v55  ;;  %1806 = vtanh.f32 %v463_v53  ;;  %v1674_v16 = vpack.c.bf16 %v699_v15, %v697_v14 }
 0x203   :  { %1480 = vmatmul.mubr.f32.gmra.mrb[24].mxu0 %v1795_v52  ;;  %1808 = vtanh.f32 %v458_v56 }
 0x204   :  { %v1799_v57 = vpop.eup %1798  ;;  %1675 = vmatprep.subr.bf16.mxu1 %v1674_v16 }
 0x205   :  { %v1801_v58 = vpop.eup %1800  ;;  %1677 = vmatpush1.bf16.msra.mxu1 %v1676_v19  ;;  %v909_v19 = vld [vmem:[%s2378_s4 + $0x48] sm:$0xff] }
 0x206   :  { %1482 = vmatprep.mubr.f32.mxu0 %v1801_v58  ;;  %v1694_v21 = vpack.c.bf16 %v909_v19, %v908_v18 }
 0x207   :  { %1483 = vmatmul.mubr.f32.gmra.mrb[26].mxu0 %v1799_v57 }
 0x208   :  { %v1803_v59 = vpop.eup %1802  ;;  %1695 = vmatprep.subr.bf16.mxu0 %v1694_v21 }
 0x209   :  { %v1805_v60 = vpop.eup %1804  ;;  %1697 = vmatpush3.bf16.msra.mxu0 %v1694_v21 }
 0x20a   :  { %1485 = vmatprep.mubr.f32.mxu0 %v1805_v60  ;;  %1699 = vmatprep.subr.bf16.mxu0 %v1698_v24 }
 0x20b   :  { %1486 = vmatmul.mubr.f32.gmra.mrb[28].mxu0 %v1803_v59 }
 0x20c   :  { %v1807_v61 = vpop.eup %1806 }
 0x20d   :  { %v1809_v62 = vpop.eup %1808  ;;  %1701 = vmatpush3.bf16.msra.mxu0 %v1698_v24 }
 0x20e   :  { %1488 = vmatprep.mubr.f32.mxu0 %v1809_v62  ;;  %1703 = vmatprep.subr.bf16.mxu0 %v1702_v27 }
 0x20f   :  { %1489 = vmatmul.mubr.f32.gmra.mrb[30].mxu0 %v1807_v61 }
 0x211   :  { %1705 = vmatpush3.bf16.msra.mxu0 %v1702_v27 }
 0x212   :  { %1707 = vmatprep.subr.bf16.mxu0 %v1706_v30 }
 0x215   :  { %1709 = vmatpush3.bf16.msra.mxu0 %v1706_v30 }
 0x2c6   :  { %v1469_v34 = vpop.f32.mrb[16].mxu0 }
 0x2c7   :  { %v573_v35 = vpop.f32.mrb[17].mxu0  ;;  %v579_v37 = vadd.f32 %v1469_v34, %v2203_v33 }
 0x2c8   :  { %v574_v36 = vadd.f32 %v2203_v33, %v573_v35 }
 0x2ca   :  { %1810 = vtanh.f32 %v574_v36  ;;  %v1472_v38 = vpop.f32.mrb[18].mxu0 }
 0x2cb   :  { %v583_v39 = vpop.f32.mrb[19].mxu0  ;;  %1812 = vtanh.f32 %v579_v37  ;;  %v589_v43 = vadd.f32 %v1472_v38, %v2203_v33 }
 0x2cc   :  { %v584_v40 = vadd.f32 %v2203_v33, %v583_v39 }
 0x2ce   :  { %v1475_v41 = vpop.f32.mrb[20].mxu0  ;;  %1814 = vtanh.f32 %v584_v40 }
 0x2cf   :  { %v593_v42 = vpop.f32.mrb[21].mxu0  ;;  %1816 = vtanh.f32 %v589_v43  ;;  %v599_v51 = vadd.f32 %v1475_v41, %v2203_v33 }
 0x2d0   :  { %v594_v47 = vadd.f32 %v2203_v33, %v593_v42 }
 0x2d2   :  { %v1478_v44 = vpop.f32.mrb[22].mxu0  ;;  %1818 = vtanh.f32 %v594_v47 }
 0x2d3   :  { %v603_v45 = vpop.f32.mrb[23].mxu0  ;;  %1820 = vtanh.f32 %v599_v51  ;;  %v609_v59 = vadd.f32 %v1478_v44, %v2203_v33 }
 0x2d4   :  { %v1811_v46 = vpop.eup %1810  ;;  %v604_v55 = vadd.f32 %v2203_v33, %v603_v45 }
 0x2d5   :  { %765 = vmatmul.mubr.f32.vlgmr.msra.gmra.mrb[16].mxu1 %v1811_v46  ;;  %v1813_v50 = vpop.eup %1812 }
 0x2d6   :  { %770 = vmatprep.mubr.f32.mxu1 %v1984_v20  ;;  %v1481_v48 = vpop.f32.mrb[24].mxu0  ;;  %1822 = vtanh.f32 %v604_v55 }
 0x2d7   :  { %v613_v49 = vpop.f32.mrb[25].mxu0  ;;  %1824 = vtanh.f32 %v609_v59  ;;  %v619_v1 = vadd.f32 %v1481_v48, %v2203_v33 }
 0x2d8   :  { %v1815_v54 = vpop.eup %1814  ;;  %v614_v63 = vadd.f32 %v2203_v33, %v613_v49 }
 0x2d9   :  { %771 = vmatmul.mubr.f32.gmra.mrb[18].mxu1 %v1813_v50  ;;  %v1817_v58 = vpop.eup %1816 }
 0x2da   :  { %776 = vmatprep.mubr.f32.mxu1 %v1984_v20  ;;  %v1484_v52 = vpop.f32.mrb[26].mxu0  ;;  %1826 = vtanh.f32 %v614_v63 }
 0x2db   :  { %v623_v53 = vpop.f32.mrb[27].mxu0  ;;  %1828 = vtanh.f32 %v619_v1  ;;  %v629_v5 = vadd.f32 %v1484_v52, %v2203_v33 }
 0x2dc   :  { %v1819_v62 = vpop.eup %1818  ;;  %v624_v3 = vadd.f32 %v2203_v33, %v623_v53 }
 0x2dd   :  { %777 = vmatmul.mubr.f32.gmra.mrb[20].mxu1 %v1815_v54  ;;  %v1821_v0 = vpop.eup %1820 }
 0x2de   :  { %782 = vmatprep.mubr.f32.mxu1 %v1984_v20  ;;  %v1487_v56 = vpop.f32.mrb[28].mxu0  ;;  %1830 = vtanh.f32 %v624_v3 }
 0x2df   :  { %v633_v57 = vpop.f32.mrb[29].mxu0  ;;  %1832 = vtanh.f32 %v629_v5  ;;  %v639_v9 = vadd.f32 %v1487_v56, %v2203_v33 }
 0x2e0   :  { %v1823_v2 = vpop.eup %1822  ;;  %v634_v7 = vadd.f32 %v2203_v33, %v633_v57 }
 0x2e1   :  { %783 = vmatmul.mubr.f32.gmra.mrb[22].mxu1 %v1817_v58  ;;  %v1825_v4 = vpop.eup %1824 }
 0x2e2   :  { %788 = vmatprep.mubr.f32.mxu1 %v1984_v20  ;;  %v1490_v60 = vpop.f32.mrb[30].mxu0  ;;  %1834 = vtanh.f32 %v634_v7 }
 0x2e3   :  { %v643_v61 = vpop.f32.mrb[31].mxu0  ;;  %1836 = vtanh.f32 %v639_v9  ;;  %v649_v13 = vadd.f32 %v1490_v60, %v2203_v33 }
 0x2e4   :  { %v1827_v6 = vpop.eup %1826  ;;  %v644_v11 = vadd.f32 %v2203_v33, %v643_v61 }
 0x2e5   :  { %789 = vmatmul.mubr.f32.gmra.mrb[24].mxu1 %v1819_v62  ;;  %v1829_v8 = vpop.eup %1828 }
 0x2e6   :  { %794 = vmatprep.mubr.f32.mxu1 %v1984_v20  ;;  %1838 = vtanh.f32 %v644_v11 }
 0x2e7   :  { %1840 = vtanh.f32 %v649_v13 }
 0x2e8   :  { %v1831_v10 = vpop.eup %1830 }
 0x2e9   :  { %795 = vmatmul.mubr.f32.gmra.mrb[26].mxu1 %v1821_v0  ;;  %v1833_v12 = vpop.eup %1832 }
 0x2ea   :  { %800 = vmatprep.mubr.f32.mxu1 %v1984_v20 }
 0x2ec   :  { %v1835_v14 = vpop.eup %1834 }
 0x2ed   :  { %801 = vmatmul.mubr.f32.gmra.mrb[28].mxu1 %v1823_v2  ;;  %v1837_v15 = vpop.eup %1836 }
 0x2ee   :  { %806 = vmatprep.mubr.f32.mxu1 %v1984_v20 }
 0x2f0   :  { %v1839_v16 = vpop.eup %1838 }
 0x2f1   :  { %807 = vmatmul.mubr.f32.gmra.mrb[30].mxu1 %v1825_v4  ;;  %v1841_v17 = vpop.eup %1840 }
 0x2f2   :  { %812 = vmatprep.mubr.f32.mxu1 %v1984_v20 }
 0x2f5   :  { %813 = vmatmul.mubr.f32.gmra.mrb[32].mxu1 %v1827_v6 }
 0x2f6   :  { %818 = vmatprep.mubr.f32.mxu1 %v1984_v20 }
 0x2f9   :  { %819 = vmatmul.mubr.f32.gmra.mrb[34].mxu1 %v1829_v8 }
 0x2fa   :  { %824 = vmatprep.mubr.f32.mxu1 %v1984_v20 }
 0x2fd   :  { %825 = vmatmul.mubr.f32.gmra.mrb[36].mxu1 %v1831_v10 }
 0x2fe   :  { %830 = vmatprep.mubr.f32.mxu1 %v1984_v20 }
 0x301   :  { %831 = vmatmul.mubr.f32.gmra.mrb[38].mxu1 %v1833_v12 }
 0x302   :  { %836 = vmatprep.mubr.f32.mxu1 %v1984_v20 }
 0x305   :  { %837 = vmatmul.mubr.f32.gmra.mrb[40].mxu1 %v1835_v14 }
 0x306   :  { %842 = vmatprep.mubr.f32.mxu1 %v1984_v20 }
 0x309   :  { %843 = vmatmul.mubr.f32.gmra.mrb[42].mxu1 %v1837_v15 }
 0x30a   :  { %848 = vmatprep.mubr.f32.mxu1 %v1984_v20 }
 0x30d   :  { %849 = vmatmul.mubr.f32.gmra.mrb[44].mxu1 %v1839_v16 }
 0x30e   :  { %854 = vmatprep.mubr.f32.mxu1 %v1984_v20 }
 0x311   :  { %855 = vmatmul.mubr.f32.gmra.mrb[46].mxu1 %v1841_v17 }
 0x312   :  { %1579 = vmatprep.mubr.msk.f32.mxu1 %vm1986_vm1, %v1984_v20 }
 0x3a8   :  { %v766_v32 = vpop.f32.mrb[16].mxu1 }
 0x3a9   :  { %v868_v33 = vadd.f32 %v2263_v31, %v766_v32  ;;  %v2266_v34 = vpop.f32.mrb[17].mxu1 }
 0x3ab   :  { %1842 = vtanh.f32 %v868_v33 }
 0x3ac   :  { %v772_v35 = vpop.f32.mrb[18].mxu1 }
 0x3ad   :  { %v869_v36 = vadd.f32 %v2263_v31, %v772_v35  ;;  %v2269_v37 = vpop.f32.mrb[19].mxu1  ;;  %v1985_v35 = vmov 0.0|0.0  }
 0x3ae   :  { %1710 = vmatprep.subr.bf16.mxu1 %v1985_v35 }
 0x3af   :  { %1844 = vtanh.f32 %v869_v36  ;;  %v1102_v36 = vld [vmem:[#allocation2] sm:$0x1] }
 0x3b0   :  { %v778_v38 = vpop.f32.mrb[20].mxu1 }
 0x3b1   :  { %v870_v39 = vadd.f32 %v2263_v31, %v778_v38  ;;  %v2272_v40 = vpop.f32.mrb[21].mxu1  ;;  %v1987_v38 = vmov 0  }
 0x3b2   :  { %1745 = vset.pattern.permute.xlu0 %v1987_v38 }
 0x3b3   :  { %1846 = vtanh.f32 %v870_v39  ;;  %1105 = vperm.xlu0 %1745, %v1102_v36   ;;  %v2318_v39 = vld [vmem:[%s2381_s7 + $0x1] ss:$0 sm:$0xff] }
 0x3b4   :  { %v784_v41 = vpop.f32.mrb[22].mxu1 }
 0x3b5   :  { %v1843_v42 = vpop.eup %1842  ;;  %v871_v43 = vadd.f32 %v2263_v31, %v784_v41  ;;  %v2275_v44 = vpop.f32.mrb[23].mxu1 }
 0x3b6   :  { %1523 = vmatprep.mubr.f32.mxu0 %v1843_v42 }
 0x3b7   :  { %1848 = vtanh.f32 %v871_v43 }
 0x3b8   :  { %v790_v45 = vpop.f32.mrb[24].mxu1 }
 0x3b9   :  { %v1845_v46 = vpop.eup %1844  ;;  %v872_v47 = vadd.f32 %v2263_v31, %v790_v45  ;;  %v2278_v48 = vpop.f32.mrb[25].mxu1 }
 0x3ba   :  { %1524 = vmatmul.mubr.f32.vlgmr.msra.gmra.mrb[32].mxu0 %v1845_v46 }
 0x3bb   :  { %1850 = vtanh.f32 %v872_v47 }
 0x3bc   :  { %v796_v49 = vpop.f32.mrb[26].mxu1 }
 0x3bd   :  { %v1847_v50 = vpop.eup %1846  ;;  %v873_v51 = vadd.f32 %v2263_v31, %v796_v49  ;;  %v2281_v52 = vpop.f32.mrb[27].mxu1 }
 0x3be   :  { %1526 = vmatprep.mubr.f32.mxu0 %v1847_v50 }
 0x3bf   :  { %1852 = vtanh.f32 %v873_v51 }
 0x3c0   :  { %v802_v53 = vpop.f32.mrb[28].mxu1 }
 0x3c1   :  { %v1849_v54 = vpop.eup %1848  ;;  %v874_v55 = vadd.f32 %v2263_v31, %v802_v53  ;;  %v2284_v56 = vpop.f32.mrb[29].mxu1 }
 0x3c2   :  { %1527 = vmatmul.mubr.f32.gmra.mrb[34].mxu0 %v1849_v54 }
 0x3c3   :  { %1854 = vtanh.f32 %v874_v55 }
 0x3c4   :  { %v808_v57 = vpop.f32.mrb[30].mxu1 }
 0x3c5   :  { %v1851_v58 = vpop.eup %1850  ;;  %v875_v59 = vadd.f32 %v2263_v31, %v808_v57  ;;  %v2287_v60 = vpop.f32.mrb[31].mxu1 }
 0x3c6   :  { %1529 = vmatprep.mubr.f32.mxu0 %v1851_v58 }
 0x3c7   :  { %1856 = vtanh.f32 %v875_v59 }
 0x3c8   :  { %v814_v61 = vpop.f32.mrb[32].mxu1 }
 0x3c9   :  { %v1853_v62 = vpop.eup %1852  ;;  %v876_v63 = vadd.f32 %v2263_v31, %v814_v61  ;;  %v2290_v0 = vpop.f32.mrb[33].mxu1 }
 0x3ca   :  { %1530 = vmatmul.mubr.f32.gmra.mrb[36].mxu0 %v1853_v62 }
 0x3cb   :  { %1858 = vtanh.f32 %v876_v63 }
 0x3cc   :  { %v820_v1 = vpop.f32.mrb[34].mxu1 }
 0x3cd   :  { %v1855_v2 = vpop.eup %1854  ;;  %v877_v3 = vadd.f32 %v2263_v31, %v820_v1  ;;  %v2293_v4 = vpop.f32.mrb[35].mxu1 }
 0x3ce   :  { %1532 = vmatprep.mubr.f32.mxu0 %v1855_v2 }
 0x3cf   :  { %1860 = vtanh.f32 %v877_v3 }
 0x3d0   :  { %v826_v5 = vpop.f32.mrb[36].mxu1 }
 0x3d1   :  { %v1857_v6 = vpop.eup %1856  ;;  %v878_v7 = vadd.f32 %v2263_v31, %v826_v5  ;;  %v2296_v8 = vpop.f32.mrb[37].mxu1 }
 0x3d2   :  { %1533 = vmatmul.mubr.f32.gmra.mrb[38].mxu0 %v1857_v6 }
 0x3d3   :  { %1862 = vtanh.f32 %v878_v7 }
 0x3d4   :  { %v832_v9 = vpop.f32.mrb[38].mxu1 }
 0x3d5   :  { %v1859_v10 = vpop.eup %1858  ;;  %v879_v11 = vadd.f32 %v2263_v31, %v832_v9  ;;  %v2299_v12 = vpop.f32.mrb[39].mxu1 }
 0x3d6   :  { %1535 = vmatprep.mubr.f32.mxu0 %v1859_v10 }
 0x3d7   :  { %1864 = vtanh.f32 %v879_v11 }
 0x3d8   :  { %v838_v13 = vpop.f32.mrb[40].mxu1 }
 0x3d9   :  { %v1861_v14 = vpop.eup %1860  ;;  %v880_v15 = vadd.f32 %v2263_v31, %v838_v13  ;;  %v2302_v16 = vpop.f32.mrb[41].mxu1 }
 0x3da   :  { %1536 = vmatmul.mubr.f32.gmra.mrb[40].mxu0 %v1861_v14 }
 0x3db   :  { %1866 = vtanh.f32 %v880_v15 }
 0x3dc   :  { %v844_v17 = vpop.f32.mrb[42].mxu1 }
 0x3dd   :  { %v1863_v18 = vpop.eup %1862  ;;  %v881_v19 = vadd.f32 %v2263_v31, %v844_v17  ;;  %v2305_v21 = vpop.f32.mrb[43].mxu1 }
 0x3de   :  { %1538 = vmatprep.mubr.f32.mxu0 %v1863_v18 }
 0x3df   :  { %1868 = vtanh.f32 %v881_v19 }
 0x3e0   :  { %v850_v22 = vpop.f32.mrb[44].mxu1 }
 0x3e1   :  { %v1865_v23 = vpop.eup %1864  ;;  %v882_v24 = vadd.f32 %v2263_v31, %v850_v22  ;;  %v2308_v25 = vpop.f32.mrb[45].mxu1 }
 0x3e2   :  { %1539 = vmatmul.mubr.f32.gmra.mrb[42].mxu0 %v1865_v23 }
 0x3e3   :  { %1870 = vtanh.f32 %v882_v24 }
 0x3e4   :  { %v856_v26 = vpop.f32.mrb[46].mxu1 }
 0x3e5   :  { %v1867_v27 = vpop.eup %1866  ;;  %v883_v28 = vadd.f32 %v2263_v31, %v856_v26  ;;  %v2311_v29 = vpop.f32.mrb[47].mxu1 }
 0x3e6   :  { %1541 = vmatprep.mubr.f32.mxu0 %v1867_v27 }
 0x3e7   :  { %1872 = vtanh.f32 %v883_v28 }
 0x3e9   :  { %v1869_v30 = vpop.eup %1868 }
 0x3ea   :  { %1542 = vmatmul.mubr.f32.gmra.mrb[44].mxu0 %v1869_v30 }
 0x3ed   :  { %v1871_v32 = vpop.eup %1870 }
 0x3ee   :  { %1544 = vmatprep.mubr.f32.mxu0 %v1871_v32 }
 0x3f1   :  { %v1873_v33 = vpop.eup %1872 }
 0x3f2   :  { %1545 = vmatmul.mubr.f32.gmra.mrb[46].mxu0 %v1873_v33 }
 0x48d   :  { %v1525_v31 = vpop.f32.mrb[32].mxu0 }
 0x48e   :  { %v988_v41 = vadd.f32 %v1525_v31, %v2269_v37  ;;  %v982_v42 = vpop.f32.mrb[33].mxu0 }
 0x48f   :  { %v983_v43 = vadd.f32 %v982_v42, %v2266_v34 }
 0x490   :  { %v1070_v45 = vadd.f32 %v2318_v39, %v988_v41 }
 0x491   :  { %v1069_v46 = vadd.f32 %v2318_v39, %v983_v43 }
 0x492   :  { %1874 = vtanh.f32 %v1070_v45 }
 0x493   :  { %1876 = vtanh.f32 %v1069_v46 }
 0x495   :  { %v1528_v20 = vpop.f32.mrb[34].mxu0 }
 0x496   :  { %v998_v47 = vadd.f32 %v1528_v20, %v2275_v44  ;;  %v992_v49 = vpop.f32.mrb[35].mxu0 }
 0x497   :  { %v993_v50 = vadd.f32 %v992_v49, %v2272_v40 }
 0x498   :  { %v1072_v51 = vadd.f32 %v2318_v39, %v998_v47 }
 0x499   :  { %v1071_v53 = vadd.f32 %v2318_v39, %v993_v50 }
 0x49a   :  { %1878 = vtanh.f32 %v1072_v51 }
 0x49b   :  { %1880 = vtanh.f32 %v1071_v53 }
 0x49c   :  { %v1875_v37 = vpop.eup %1874 }
 0x49d   :  { %v1877_v34 = vpop.eup %1876  ;;  %v1531_v54 = vpop.f32.mrb[36].mxu0 }
 0x49e   :  { %v1008_v55 = vadd.f32 %v1531_v54, %v2281_v52  ;;  %v1002_v57 = vpop.f32.mrb[37].mxu0  ;;  %v1711_v58 = vpack.c.bf16 %v1875_v37, %v1877_v34  ;;  %v1106_v34 = vpop.permute.xlu0 %1105 }
 0x49f   :  { %v1003_v59 = vadd.f32 %v1002_v57, %v2278_v48 }
 0x4a0   :  { %v1074_v44 = vadd.f32 %v2318_v39, %v1008_v55  ;;  %1712 = vmatpush3.bf16.xpose.msra.mxu1 %v1711_v58 }
 0x4a1   :  { %v1073_v40 = vadd.f32 %v2318_v39, %v1003_v59  ;;  %1713 = vmatprep.subr.bf16.mxu1 %v1985_v35 }
 0x4a2   :  { %1882 = vtanh.f32 %v1074_v44 }
 0x4a3   :  { %1884 = vtanh.f32 %v1073_v40 }
 0x4a4   :  { %v1879_v61 = vpop.eup %1878 }
 0x4a5   :  { %v1881_v62 = vpop.eup %1880  ;;  %v1534_v63 = vpop.f32.mrb[38].mxu0 }
 0x4a6   :  { %v1018_v1 = vadd.f32 %v1534_v63, %v2287_v60  ;;  %v1012_v2 = vpop.f32.mrb[39].mxu0  ;;  %v1714_v52 = vpack.c.bf16 %v1879_v61, %v1881_v62 }
 0x4a7   :  { %v1013_v3 = vadd.f32 %v1012_v2, %v2284_v56 }
 0x4a8   :  { %v1076_v48 = vadd.f32 %v2318_v39, %v1018_v1  ;;  %1715 = vmatpush3.bf16.xpose.msra.mxu1 %v1714_v52 }
 0x4a9   :  { %v1075_v5 = vadd.f32 %v2318_v39, %v1013_v3  ;;  %1716 = vmatprep.subr.bf16.mxu1 %v1985_v35 }
 0x4aa   :  { %1886 = vtanh.f32 %v1076_v48 }
 0x4ab   :  { %1888 = vtanh.f32 %v1075_v5 }
 0x4ac   :  { %v1883_v6 = vpop.eup %1882 }
 0x4ad   :  { %v1885_v7 = vpop.eup %1884  ;;  %v1537_v9 = vpop.f32.mrb[40].mxu0 }
 0x4ae   :  { %v1028_v10 = vadd.f32 %v1537_v9, %v2293_v4  ;;  %v1022_v11 = vpop.f32.mrb[41].mxu0  ;;  %v1717_v60 = vpack.c.bf16 %v1883_v6, %v1885_v7 }
 0x4af   :  { %v1023_v13 = vadd.f32 %v1022_v11, %v2290_v0 }
 0x4b0   :  { %v1078_v56 = vadd.f32 %v2318_v39, %v1028_v10  ;;  %1718 = vmatpush3.bf16.xpose.msra.mxu1 %v1717_v60 }
 0x4b1   :  { %v1077_v14 = vadd.f32 %v2318_v39, %v1023_v13  ;;  %1719 = vmatprep.subr.bf16.mxu1 %v1985_v35 }
 0x4b2   :  { %1890 = vtanh.f32 %v1078_v56 }
 0x4b3   :  { %1892 = vtanh.f32 %v1077_v14 }
 0x4b4   :  { %v1887_v15 = vpop.eup %1886 }
 0x4b5   :  { %v1889_v17 = vpop.eup %1888  ;;  %v1540_v18 = vpop.f32.mrb[42].mxu0 }
 0x4b6   :  { %v1038_v19 = vadd.f32 %v1540_v18, %v2299_v12  ;;  %v1032_v22 = vpop.f32.mrb[43].mxu0  ;;  %v1720_v4 = vpack.c.bf16 %v1887_v15, %v1889_v17 }
 0x4b7   :  { %v1033_v23 = vadd.f32 %v1032_v22, %v2296_v8 }
 0x4b8   :  { %v1080_v0 = vadd.f32 %v2318_v39, %v1038_v19  ;;  %1721 = vmatpush3.bf16.xpose.msra.mxu1 %v1720_v4 }
 0x4b9   :  { %v1079_v24 = vadd.f32 %v2318_v39, %v1033_v23  ;;  %1722 = vmatprep.subr.bf16.mxu1 %v1985_v35 }
 0x4ba   :  { %1894 = vtanh.f32 %v1080_v0 }
 0x4bb   :  { %1896 = vtanh.f32 %v1079_v24 }
 0x4bc   :  { %v1891_v26 = vpop.eup %1890 }
 0x4bd   :  { %v1893_v27 = vpop.eup %1892  ;;  %v1543_v28 = vpop.f32.mrb[44].mxu0 }
 0x4be   :  { %v1048_v30 = vadd.f32 %v1543_v28, %v2305_v21  ;;  %v1042_v32 = vpop.f32.mrb[45].mxu0  ;;  %v1723_v12 = vpack.c.bf16 %v1891_v26, %v1893_v27 }
 0x4bf   :  { %v1043_v33 = vadd.f32 %v1042_v32, %v2302_v16 }
 0x4c0   :  { %v1082_v8 = vadd.f32 %v2318_v39, %v1048_v30  ;;  %1724 = vmatpush3.bf16.xpose.msra.mxu1 %v1723_v12 }
 0x4c1   :  { %v1081_v36 = vadd.f32 %v2318_v39, %v1043_v33  ;;  %1725 = vmatprep.subr.bf16.mxu1 %v1985_v35 }
 0x4c2   :  { %1898 = vtanh.f32 %v1082_v8 }
 0x4c3   :  { %1900 = vtanh.f32 %v1081_v36 }
 0x4c4   :  { %v1895_v38 = vpop.eup %1894 }
 0x4c5   :  { %v1897_v31 = vpop.eup %1896  ;;  %v1546_v41 = vpop.f32.mrb[46].mxu0 }
 0x4c6   :  { %v1058_v42 = vadd.f32 %v1546_v41, %v2311_v29  ;;  %v1052_v43 = vpop.f32.mrb[47].mxu0  ;;  %v1726_v21 = vpack.c.bf16 %v1895_v38, %v1897_v31 }
 0x4c7   :  { %v1053_v45 = vadd.f32 %v1052_v43, %v2308_v25  ;;  %v1101_v25 = vld [vmem:[%s2379_s5] sm:$0x1] }
 0x4c8   :  { %v1084_v16 = vadd.f32 %v2318_v39, %v1058_v42  ;;  %1727 = vmatpush3.bf16.xpose.msra.mxu1 %v1726_v21 }
 0x4c9   :  { %v1083_v46 = vadd.f32 %v2318_v39, %v1053_v45  ;;  %1728 = vmatprep.subr.bf16.mxu1 %v1985_v35  ;;  %v1108_v39 = vlaneseq }
 0x4ca   :  { %1902 = vtanh.f32 %v1084_v16 }
 0x4cb   :  { %1904 = vtanh.f32 %v1083_v46  ;;  %v1109_v53 = vshrl.u32 %v1108_v39, 7 }
 0x4cc   :  { %v1899_v20 = vpop.eup %1898 }
 0x4cd   :  { %v1901_v47 = vpop.eup %1900  ;;  %v1110_v37 = vsub.s32 0, %v1109_v53 }
 0x4ce   :  { %v1729_v49 = vpack.c.bf16 %v1899_v20, %v1901_v47 }
 0x4cf   :  { %v1111_v54 = vrot.slane %v1106_v34, %v1110_v37 }
 0x4d0   :  { %1730 = vmatpush3.bf16.xpose.msra.mxu1 %v1729_v49 }
 0x4d1   :  { %1731 = vmatprep.subr.bf16.mxu1 %v1985_v35 }
 0x4d4   :  { %v1903_v29 = vpop.eup %1902 }
 0x4d5   :  { %v1905_v50 = vpop.eup %1904 }
 0x4d6   :  { %v1732_v51 = vpack.c.bf16 %v1903_v29, %v1905_v50 }
 0x4d8   :  { %1733 = vmatpush3.bf16.xpose.msra.mxu1 %v1732_v51 }
 0x4df   :  { %1580 = vmatmul.mubr.f32.vlgmr.msra.gmra.mrb[48].mxu1 %v1101_v25 }
 0x5b2   :  { %v1178_v55 = vpop.f32.mrb[48].mxu1 }
 0x5b3   :  { %v1179_v57 = vadd.f32 %v1178_v55, %v1111_v54  ;;  %v1581_v58 = vpop.f32.mrb[49].mxu1 }
 0x5b5   :  { %1182 = vst [vmem:[#allocation8] sm:$0x1] %v1179_v57 }
 0x5b6   :  { %1961 = shalt.err (!%p1958_p6)
}
 0x5b7   :  { %s1962_s19 = scalar_lea.hbm %s2383_s9, 16 }
 0x5b8   :  { %p1963_p7 = scmp.ne.s32.totalorder %s2383_s9, %s1962_s19  ;;  %p1966_p8 = scmp.lt.u32.totalorder %s1962_s19, %s2383_s9 }
 0x5ba   :  { %p1968_p9 = pnand %p1966_p8, %p1963_p7 }
 0x5bc   :  { %1971 = shalt.err (!%p1968_p9)
}
 0x5bd   :  { %1192 = dma.vmem_to_hbm [thread:$0]  %s1190_s15, 16, %s2383_s9, [#allocation5]  }
 0x5be   :  { %1976 = dma.done.wait [#allocation5], 16  }
 0x5bf   :  { %1977 = vsyncadd [#allocation5], 4294967280 }
 0x5c0   :  { %1196 = vsyncpa [#allocation4], 1 }
 0x5c1   :  { %1197 = vsyncpa [#allocation7], 1 }
 0x5c2   :  { %1198 = vsyncpa [#allocation5], 1 }

</bundles_post_ra>
